<compile_context>
chip_gen: v6e
topology: v6e:2x2x1
jax: 0.10.0
libtpu: 0.0.40
codegen_flags: <defaults>
</compile_context>

<pallas_src>
import functools

import jax
import jax.numpy as jnp
import numpy as np
from jax import lax
from jax.experimental import pallas as pl
from jax.experimental.pallas import tpu as pltpu


# -----------------------------------------------------------------------------
# Generation-aware VMEM budget (v5e/v6e: 128 MiB parts, v7x: 64 MiB parts).
# -----------------------------------------------------------------------------
@functools.lru_cache(maxsize=None)
def _vmem_limit_bytes():
    cap = 64 * 1024 * 1024  # conservative fallback == v7x per-TC VMEM
    try:
        cap = int(pltpu.get_tpu_info().vmem_capacity_bytes)
    except Exception:
        pass
    # leave headroom for Mosaic internal scratch / double-buffering bookkeeping
    return max(32 * 1024 * 1024, min(cap - 16 * 1024 * 1024, 100 * 1024 * 1024))


# -----------------------------------------------------------------------------
# 3x3 / stride-2 / pad-1 pooling selectors (compile-time constants, cached).
# sel[k] is a one-hot (Ho*Wo, H2*W2) gather matrix for window tap k = ky*3+kx;
# out-of-bounds taps are all-zero rows (equivalent to -inf padding because the
# pooled value is clipped at 0 immediately after the max).
# -----------------------------------------------------------------------------
@functools.lru_cache(maxsize=None)
def _pool_selectors_np(H2, W2):
    Ho = (H2 + 2 - 3) // 2 + 1
    Wo = (W2 + 2 - 3) // 2 + 1
    sel = np.zeros((9, Ho * Wo, H2 * W2), np.float32)
    for ky in range(3):
        for kx in range(3):
            k = ky * 3 + kx
            for oy in range(Ho):
                r = 2 * oy - 1 + ky
                if not 0 <= r < H2:
                    continue
                for ox in range(Wo):
                    c = 2 * ox - 1 + kx
                    if not 0 <= c < W2:
                        continue
                    sel[k, oy * Wo + ox, r * W2 + c] = 1.0
    return sel


@functools.lru_cache(maxsize=None)
def _pool_selectors(H2, W2):
    # cached bf16 device constant; a baked jaxpr constant when the loss is jitted
    return jnp.asarray(_pool_selectors_np(H2, W2), dtype=jnp.bfloat16)


def _rectify_pow15(r):
    # r >= 0; r ** 1.5 as r * sqrt(r), where-guarded so the r == 0 point stays
    # finite if this kernel is ever differentiated (0 * inf from d/dr sqrt).
    safe = jnp.where(r > 0.0, r, 1.0)
    return jnp.where(r > 0.0, safe * jnp.sqrt(safe), 0.0)


# -----------------------------------------------------------------------------
# Fused kernel: correlation matmul + max-pool + rectify^2 + L1 norm + sq-sum
#   d1_ref : (1, D, TQ)     bf16     d2_ref : (1, D, HW2)   bf16
#   sel_ref: (9, HoWo, HW2) bf16     out_ref: (1, 1, TQ)    f32  (per-cell sq-sum)
# Everything is kept in the "transposed" (HW2/HoWo sublane, TQ lane) layout so
# the epilogue reductions are sublane reductions and the output row is
# lane-dense with no relayout.
# -----------------------------------------------------------------------------
def _fused_corr_pool_kernel(d1_ref, d2_ref, sel_ref, out_ref, *, eps):
    # Correlation: corr_t[j, q] = sum_d d2[d, j] * d1[d, q].  Both operands
    # contract over their sublane (D) axis -> MXU-native transposed-LHS matmul,
    # bf16 inputs with f32 accumulation.
    corr_t = lax.dot_general(
        d2_ref[0], d1_ref[0],
        dimension_numbers=(((0,), (0,)), ((), ())),
        preferred_element_type=jnp.float32,
    )                                                       # (HW2, TQ) f32

    # 3x3 / stride-2 / pad-1 max-pool as the max of 9 one-hot gather matmuls
    # (bf16 MXU fast path; exact up to the bf16 rounding of corr).
    # TODO(synk): for large HW2 switch to XLU/VPU shift-and-max pooling and
    # drop the selector operand entirely.
    corr_bf = corr_t.astype(jnp.bfloat16)
    pooled = jnp.dot(sel_ref[0], corr_bf, preferred_element_type=jnp.float32)
    for k in range(1, 9):
        pooled = jnp.maximum(
            pooled, jnp.dot(sel_ref[k], corr_bf, preferred_element_type=jnp.float32))
    # pooled: (HoWo, TQ) f32.  Keep the clip adjacent to the pool: the all-zero
    # selector rows (out-of-bounds taps) are only equivalent to -inf padding
    # because of this clip.
    r = _rectify_pow15(jnp.maximum(pooled, 0.0))            # level rectify
    r = _rectify_pow15(r)                                   # loss-head rectify

    # L1 normalisation folded into the squared sum:
    #   sum_o (r / (s + eps))^2 = (sum_o r^2) * (1 / (s + eps))^2
    s = jnp.sum(r, axis=0, keepdims=True)                   # (1, TQ) lane-dense
    inv = pl.reciprocal(s + eps, approx=True)               # EUP slot
    per_cell = jnp.sum(r * r, axis=0, keepdims=True) * (inv * inv)   # (1, TQ)
    out_ref[...] = per_cell.reshape(1, 1, -1)               # lane-dense store


def _choose_tq(HW1):
    """Query tile size and padded HW1: single block for small HW1, otherwise
    pad to a multiple of 128 and tile with TQ in {128, 256}."""
    if HW1 <= 256:
        return HW1, HW1
    HW1p = HW1 + (-HW1) % 128
    tq = 256 if HW1p % 256 == 0 else 128
    return tq, HW1p


def fused_corr_pool(d1, d2, sel, *, eps, tq):
    """d1: (B, D, HW1p) bf16, d2: (B, D, HW2) bf16, sel: (9, HoWo, HW2) bf16.
    Returns (B, 1, HW1p) f32: per-query-cell sum of the squared L1-normalised,
    pooled+rectified correlation map."""
    B, D, HW1p = d1.shape
    HW2 = d2.shape[-1]
    HoWo = sel.shape[1]
    QT = HW1p // tq

    kern = functools.partial(_fused_corr_pool_kernel, eps=float(eps))
    return pl.pallas_call(
        kern,
        out_shape=jax.ShapeDtypeStruct((B, 1, HW1p), jnp.float32),
        grid=(B, QT),  # q innermost: q-invariant d2/sel blocks fetched once per b
        in_specs=[
            pl.BlockSpec((1, D, tq), lambda b, q: (b, 0, q)),
            pl.BlockSpec((1, D, HW2), lambda b, q: (b, 0, 0)),
            pl.BlockSpec((9, HoWo, HW2), lambda b, q: (0, 0, 0)),
        ],
        out_specs=pl.BlockSpec((1, 1, tq), lambda b, q: (b, 0, q)),
        compiler_params=pltpu.CompilerParams(
            dimension_semantics=("parallel", "parallel"),
            vmem_limit_bytes=_vmem_limit_bytes(),
        ),
    )(d1, d2, sel)


# -----------------------------------------------------------------------------
# DeepMatchingLoss forward (slicing glue in plain JAX, compute in Pallas)
# -----------------------------------------------------------------------------
def forward_oneway(desc1, desc2, *, border=16, sub=2, eps=0.03):
    s = slice(border, -border if border else None, sub)
    d1 = desc1[:, :, s, s]
    d2 = desc2[:, :, s, s]
    d1 = d1[:, :, 2::4, 2::4]
    B, D, H1, W1 = d1.shape
    H2, W2 = d2.shape[-2:]
    if B == 0:
        return jnp.float32(0.0)
    HW1, HW2 = H1 * W1, H2 * W2

    # bf16 operands (f32 accumulation inside the kernel): bf16 MXU fast path on
    # v5e/v6e/v7x and half the HBM->VMEM bytes; no transpose materialised.
    a = d1.reshape(B, D, HW1).astype(jnp.bfloat16)
    b = d2.reshape(B, D, HW2).astype(jnp.bfloat16)

    tq, HW1p = _choose_tq(HW1)
    if HW1p != HW1:
        # zero-padded query cells -> all-zero correlation column -> exactly 0
        # contribution to the loss sum.
        a = jnp.pad(a, ((0, 0), (0, 0), (0, HW1p - HW1)))

    sel = _pool_selectors(H2, W2)   # cached bf16 constant

    # deep_matching level 1 (max-pool + rectify) fused with the correlation and
    # the loss-head rectify/normalise/square-sum.
    # TODO(synk): sparse_conv parent aggregation (myF.children / inverse_mapping
    # / norm_borders unavailable) — pyramid truncated after level-1 pool+rectify.
    per_cell = fused_corr_pool(a, b, sel, eps=eps, tq=tq)    # (B, 1, HW1p)
    return -jnp.sum(per_cell) / (B * HW1)


def deep_matching_loss(desc1, desc2, *, way="12", border=16, sub=2, eps=0.03):
    loss1 = forward_oneway(desc1, desc2, border=border, sub=sub, eps=eps) if "1" in way else 0.0
    loss2 = forward_oneway(desc2, desc1, border=border, sub=sub, eps=eps) if "2" in way else 0.0
    return dict(deepm_loss=(loss1 + loss2) / len(way))


# -----------------------------------------------------------------------------
# Pure-JAX reference of the same (truncated) pipeline, for a sanity check.
# -----------------------------------------------------------------------------
def _ref_oneway(desc1, desc2, *, border=16, sub=2, eps=0.03):
    s = slice(border, -border if border else None, sub)
    d1 = desc1[:, :, s, s][:, :, 2::4, 2::4]
    d2 = desc2[:, :, s, s]
    B, D, H1, W1 = d1.shape
    H2, W2 = d2.shape[-2:]
    a = jnp.transpose(d1.reshape(B, D, H1 * W1), (0, 2, 1))
    b = d2.reshape(B, D, H2 * W2)
    corr = jnp.einsum("bij,bjk->bik", a, b).reshape(B * H1 * W1, H2, W2)
    pooled = jax.lax.reduce_window(
        corr, -jnp.inf, jax.lax.max, (1, 3, 3), (1, 2, 2), ((0, 0), (1, 1), (1, 1))
    )
    r = jnp.maximum(pooled, 0.0) ** 1.5   # forward_level rectify
    r = jnp.maximum(r, 0.0) ** 1.5        # forward_oneway rectify
    y = r.reshape(B * H1 * W1, -1)
    yn = y / (y.sum(-1, keepdims=True) + eps)
    return -jnp.sum(yn * yn) / (B * H1 * W1)


def _ref_loss(desc1, desc2):
    return (_ref_oneway(desc1, desc2) + _ref_oneway(desc2, desc1)) / 2.0


if __name__ == "__main__":
    key = jax.random.PRNGKey(0)
    k1, k2 = jax.random.split(key)
    B, D, H, W = 2, 16, 48, 48  # after border=16 crop, sub=2: H2=W2=8; H1=W1=2
    desc1 = jax.random.normal(k1, (B, D, H, W), dtype=jnp.float32)
    desc2 = jax.random.normal(k2, (B, D, H, W), dtype=jnp.float32)

    loss_fn = jax.jit(lambda x, y: deep_matching_loss(x, y)["deepm_loss"])
    loss = jax.block_until_ready(loss_fn(desc1, desc2))

    ref = jax.block_until_ready(_ref_loss(desc1, desc2))
    np.testing.assert_allclose(np.asarray(loss), np.asarray(ref), rtol=5e-2, atol=1e-3)
    assert np.isfinite(np.asarray(loss))
    print("KERNEL_OK")
</pallas_src>

<mosaic_0001>
module attributes {stable_mosaic.version = 11 : i64} {
  func.func @_fused_corr_pool_kernel(%arg0: i32, %arg1: i32, %arg2: memref<1x16x4xbf16, #tpu.memory_space<vmem>>, %arg3: memref<1x16x64xbf16, #tpu.memory_space<vmem>>, %arg4: memref<9x16x64xbf16, #tpu.memory_space<vmem>>, %arg5: memref<1x1x4xf32, #tpu.memory_space<vmem>>) attributes {dimension_semantics = [#tpu.dimension_semantics<parallel>, #tpu.dimension_semantics<parallel>], iteration_bounds = array<i64: 2, 1>, scalar_prefetch = 0 : i64, scratch_operands = 0 : i64, tpu.core_type = #tpu.core_type<tc>, window_params = [{transform_indices = @transform_0, window_bounds = array<i64: 1, 16, 4>}, {transform_indices = @transform_1, window_bounds = array<i64: 1, 16, 64>}, {pipeline_mode = #tpu.pipeline_mode<synchronous>, transform_indices = @transform_2, window_bounds = array<i64: 9, 16, 64>}, {transform_indices = @transform_3, window_bounds = array<i64: 1, 1, 4>}]} {
    %c0 = arith.constant 0 : index
    %c0_0 = arith.constant 0 : index
    %c0_1 = arith.constant 0 : index
    %0 = vector.load %arg3[%c0, %c0_0, %c0_1] : memref<1x16x64xbf16, #tpu.memory_space<vmem>>, vector<1x16x64xbf16>
    %1 = vector.shape_cast %0 : vector<1x16x64xbf16> to vector<16x64xbf16>
    %c0_2 = arith.constant 0 : index
    %c0_3 = arith.constant 0 : index
    %c0_4 = arith.constant 0 : index
    %2 = vector.load %arg2[%c0_2, %c0_3, %c0_4] : memref<1x16x4xbf16, #tpu.memory_space<vmem>>, vector<1x16x4xbf16>
    %3 = vector.shape_cast %2 : vector<1x16x4xbf16> to vector<16x4xbf16>
    %cst = arith.constant dense<0.000000e+00> : vector<64x4xf32>
    %4 = tpu.matmul %1, %3, %cst {dimension_numbers = #tpu.dot_dimension_numbers<[0], [0], [1], [1], [0, 1, 1, 1], [], []>} : vector<16x64xbf16>, vector<16x4xbf16>, vector<64x4xf32> -> vector<64x4xf32>
    %5 = arith.truncf %4 : vector<64x4xf32> to vector<64x4xbf16>
    %c0_5 = arith.constant 0 : index
    %c0_6 = arith.constant 0 : index
    %c0_7 = arith.constant 0 : index
    %6 = vector.load %arg4[%c0_5, %c0_6, %c0_7] : memref<9x16x64xbf16, #tpu.memory_space<vmem>>, vector<1x16x64xbf16>
    %7 = vector.shape_cast %6 : vector<1x16x64xbf16> to vector<16x64xbf16>
    %cst_8 = arith.constant dense<0.000000e+00> : vector<16x4xf32>
    %8 = tpu.matmul %7, %5, %cst_8 {dimension_numbers = #tpu.dot_dimension_numbers<[1], [0], [0], [1], [0, 0, 1, 1], [], []>} : vector<16x64xbf16>, vector<64x4xbf16>, vector<16x4xf32> -> vector<16x4xf32>
    %c1 = arith.constant 1 : index
    %c0_9 = arith.constant 0 : index
    %c0_10 = arith.constant 0 : index
    %9 = vector.load %arg4[%c1, %c0_9, %c0_10] : memref<9x16x64xbf16, #tpu.memory_space<vmem>>, vector<1x16x64xbf16>
    %10 = vector.shape_cast %9 : vector<1x16x64xbf16> to vector<16x64xbf16>
    %cst_11 = arith.constant dense<0.000000e+00> : vector<16x4xf32>
    %11 = tpu.matmul %10, %5, %cst_11 {dimension_numbers = #tpu.dot_dimension_numbers<[1], [0], [0], [1], [0, 0, 1, 1], [], []>} : vector<16x64xbf16>, vector<64x4xbf16>, vector<16x4xf32> -> vector<16x4xf32>
    %12 = arith.maximumf %8, %11 : vector<16x4xf32>
    %c2 = arith.constant 2 : index
    %c0_12 = arith.constant 0 : index
    %c0_13 = arith.constant 0 : index
    %13 = vector.load %arg4[%c2, %c0_12, %c0_13] : memref<9x16x64xbf16, #tpu.memory_space<vmem>>, vector<1x16x64xbf16>
    %14 = vector.shape_cast %13 : vector<1x16x64xbf16> to vector<16x64xbf16>
    %cst_14 = arith.constant dense<0.000000e+00> : vector<16x4xf32>
    %15 = tpu.matmul %14, %5, %cst_14 {dimension_numbers = #tpu.dot_dimension_numbers<[1], [0], [0], [1], [0, 0, 1, 1], [], []>} : vector<16x64xbf16>, vector<64x4xbf16>, vector<16x4xf32> -> vector<16x4xf32>
    %16 = arith.maximumf %12, %15 : vector<16x4xf32>
    %c3 = arith.constant 3 : index
    %c0_15 = arith.constant 0 : index
    %c0_16 = arith.constant 0 : index
    %17 = vector.load %arg4[%c3, %c0_15, %c0_16] : memref<9x16x64xbf16, #tpu.memory_space<vmem>>, vector<1x16x64xbf16>
    %18 = vector.shape_cast %17 : vector<1x16x64xbf16> to vector<16x64xbf16>
    %cst_17 = arith.constant dense<0.000000e+00> : vector<16x4xf32>
    %19 = tpu.matmul %18, %5, %cst_17 {dimension_numbers = #tpu.dot_dimension_numbers<[1], [0], [0], [1], [0, 0, 1, 1], [], []>} : vector<16x64xbf16>, vector<64x4xbf16>, vector<16x4xf32> -> vector<16x4xf32>
    %20 = arith.maximumf %16, %19 : vector<16x4xf32>
    %c4 = arith.constant 4 : index
    %c0_18 = arith.constant 0 : index
    %c0_19 = arith.constant 0 : index
    %21 = vector.load %arg4[%c4, %c0_18, %c0_19] : memref<9x16x64xbf16, #tpu.memory_space<vmem>>, vector<1x16x64xbf16>
    %22 = vector.shape_cast %21 : vector<1x16x64xbf16> to vector<16x64xbf16>
    %cst_20 = arith.constant dense<0.000000e+00> : vector<16x4xf32>
    %23 = tpu.matmul %22, %5, %cst_20 {dimension_numbers = #tpu.dot_dimension_numbers<[1], [0], [0], [1], [0, 0, 1, 1], [], []>} : vector<16x64xbf16>, vector<64x4xbf16>, vector<16x4xf32> -> vector<16x4xf32>
    %24 = arith.maximumf %20, %23 : vector<16x4xf32>
    %c5 = arith.constant 5 : index
    %c0_21 = arith.constant 0 : index
    %c0_22 = arith.constant 0 : index
    %25 = vector.load %arg4[%c5, %c0_21, %c0_22] : memref<9x16x64xbf16, #tpu.memory_space<vmem>>, vector<1x16x64xbf16>
    %26 = vector.shape_cast %25 : vector<1x16x64xbf16> to vector<16x64xbf16>
    %cst_23 = arith.constant dense<0.000000e+00> : vector<16x4xf32>
    %27 = tpu.matmul %26, %5, %cst_23 {dimension_numbers = #tpu.dot_dimension_numbers<[1], [0], [0], [1], [0, 0, 1, 1], [], []>} : vector<16x64xbf16>, vector<64x4xbf16>, vector<16x4xf32> -> vector<16x4xf32>
    %28 = arith.maximumf %24, %27 : vector<16x4xf32>
    %c6 = arith.constant 6 : index
    %c0_24 = arith.constant 0 : index
    %c0_25 = arith.constant 0 : index
    %29 = vector.load %arg4[%c6, %c0_24, %c0_25] : memref<9x16x64xbf16, #tpu.memory_space<vmem>>, vector<1x16x64xbf16>
    %30 = vector.shape_cast %29 : vector<1x16x64xbf16> to vector<16x64xbf16>
    %cst_26 = arith.constant dense<0.000000e+00> : vector<16x4xf32>
    %31 = tpu.matmul %30, %5, %cst_26 {dimension_numbers = #tpu.dot_dimension_numbers<[1], [0], [0], [1], [0, 0, 1, 1], [], []>} : vector<16x64xbf16>, vector<64x4xbf16>, vector<16x4xf32> -> vector<16x4xf32>
    %32 = arith.maximumf %28, %31 : vector<16x4xf32>
    %c7 = arith.constant 7 : index
    %c0_27 = arith.constant 0 : index
    %c0_28 = arith.constant 0 : index
    %33 = vector.load %arg4[%c7, %c0_27, %c0_28] : memref<9x16x64xbf16, #tpu.memory_space<vmem>>, vector<1x16x64xbf16>
    %34 = vector.shape_cast %33 : vector<1x16x64xbf16> to vector<16x64xbf16>
    %cst_29 = arith.constant dense<0.000000e+00> : vector<16x4xf32>
    %35 = tpu.matmul %34, %5, %cst_29 {dimension_numbers = #tpu.dot_dimension_numbers<[1], [0], [0], [1], [0, 0, 1, 1], [], []>} : vector<16x64xbf16>, vector<64x4xbf16>, vector<16x4xf32> -> vector<16x4xf32>
    %36 = arith.maximumf %32, %35 : vector<16x4xf32>
    %c8 = arith.constant 8 : index
    %c0_30 = arith.constant 0 : index
    %c0_31 = arith.constant 0 : index
    %37 = vector.load %arg4[%c8, %c0_30, %c0_31] : memref<9x16x64xbf16, #tpu.memory_space<vmem>>, vector<1x16x64xbf16>
    %38 = vector.shape_cast %37 : vector<1x16x64xbf16> to vector<16x64xbf16>
    %cst_32 = arith.constant dense<0.000000e+00> : vector<16x4xf32>
    %39 = tpu.matmul %38, %5, %cst_32 {dimension_numbers = #tpu.dot_dimension_numbers<[1], [0], [0], [1], [0, 0, 1, 1], [], []>} : vector<16x64xbf16>, vector<64x4xbf16>, vector<16x4xf32> -> vector<16x4xf32>
    %40 = arith.maximumf %36, %39 : vector<16x4xf32>
    %cst_33 = arith.constant 0.000000e+00 : f32
    %41 = vector.broadcast %cst_33 : f32 to vector<16x4xf32>
    %42 = arith.maximumf %40, %41 : vector<16x4xf32>
    %cst_34 = arith.constant 0.000000e+00 : f32
    %43 = vector.broadcast %cst_34 : f32 to vector<16x4xf32>
    %44 = arith.cmpf ogt, %42, %43 : vector<16x4xf32>
    %cst_35 = arith.constant 1.000000e+00 : f32
    %45 = vector.broadcast %cst_35 : f32 to vector<16x4xf32>
    %46 = arith.select %44, %42, %45 : vector<16x4xi1>, vector<16x4xf32>
    %cst_36 = arith.constant 0.000000e+00 : f32
    %47 = vector.broadcast %cst_36 : f32 to vector<16x4xf32>
    %48 = arith.cmpf ogt, %42, %47 : vector<16x4xf32>
    %49 = math.sqrt %46 : vector<16x4xf32>
    %50 = arith.mulf %46, %49 : vector<16x4xf32>
    %cst_37 = arith.constant 0.000000e+00 : f32
    %51 = vector.broadcast %cst_37 : f32 to vector<16x4xf32>
    %52 = arith.select %48, %50, %51 : vector<16x4xi1>, vector<16x4xf32>
    %cst_38 = arith.constant 0.000000e+00 : f32
    %53 = vector.broadcast %cst_38 : f32 to vector<16x4xf32>
    %54 = arith.cmpf ogt, %52, %53 : vector<16x4xf32>
    %cst_39 = arith.constant 1.000000e+00 : f32
    %55 = vector.broadcast %cst_39 : f32 to vector<16x4xf32>
    %56 = arith.select %54, %52, %55 : vector<16x4xi1>, vector<16x4xf32>
    %cst_40 = arith.constant 0.000000e+00 : f32
    %57 = vector.broadcast %cst_40 : f32 to vector<16x4xf32>
    %58 = arith.cmpf ogt, %52, %57 : vector<16x4xf32>
    %59 = math.sqrt %56 : vector<16x4xf32>
    %60 = arith.mulf %56, %59 : vector<16x4xf32>
    %cst_41 = arith.constant 0.000000e+00 : f32
    %61 = vector.broadcast %cst_41 : f32 to vector<16x4xf32>
    %62 = arith.select %58, %60, %61 : vector<16x4xi1>, vector<16x4xf32>
    %cst_42 = arith.constant dense<0.000000e+00> : vector<4xf32>
    %63 = vector.multi_reduction <add>, %62, %cst_42 [0] : vector<16x4xf32> to vector<4xf32>
    %64 = vector.shape_cast %63 : vector<4xf32> to vector<1x4xf32>
    %cst_43 = arith.constant 3.000000e-02 : f32
    %65 = vector.broadcast %cst_43 : f32 to vector<1x4xf32>
    %66 = arith.addf %64, %65 : vector<1x4xf32>
    %67 = tpu.reciprocal %66 {approx = true} : vector<1x4xf32> -> vector<1x4xf32>
    %68 = arith.mulf %62, %62 : vector<16x4xf32>
    %cst_44 = arith.constant dense<0.000000e+00> : vector<4xf32>
    %69 = vector.multi_reduction <add>, %68, %cst_44 [0] : vector<16x4xf32> to vector<4xf32>
    %70 = vector.shape_cast %69 : vector<4xf32> to vector<1x4xf32>
    %71 = arith.mulf %67, %67 : vector<1x4xf32>
    %72 = arith.mulf %70, %71 : vector<1x4xf32>
    %73 = vector.shape_cast %72 : vector<1x4xf32> to vector<1x1x4xf32>
    %c0_45 = arith.constant 0 : index
    %c0_46 = arith.constant 0 : index
    %c0_47 = arith.constant 0 : index
    %74 = vector.load %arg5[%c0_45, %c0_46, %c0_47] : memref<1x1x4xf32, #tpu.memory_space<vmem>>, vector<1x1x4xf32>
    tpu.vector_store %arg5[%c0_45, %c0_46, %c0_47], %73 {strides = array<i32>} : memref<1x1x4xf32, #tpu.memory_space<vmem>>, vector<1x1x4xf32>,
    return
  }
  func.func @transform_0(%arg0: i32, %arg1: i32) -> (i32, i32, i32) {
    %c0_i32 = arith.constant 0 : i32
    %c0_i32_0 = arith.constant 0 : i32
    return %arg0, %c0_i32, %arg1 : i32, i32, i32
  }
  func.func @transform_1(%arg0: i32, %arg1: i32) -> (i32, i32, i32) {
    %c0_i32 = arith.constant 0 : i32
    %c0_i32_0 = arith.constant 0 : i32
    %c0_i32_1 = arith.constant 0 : i32
    return %arg0, %c0_i32, %c0_i32_0 : i32, i32, i32
  }
  func.func @transform_2(%arg0: i32, %arg1: i32) -> (i32, i32, i32) {
    %c0_i32 = arith.constant 0 : i32
    %c0_i32_0 = arith.constant 0 : i32
    %c0_i32_1 = arith.constant 0 : i32
    %c0_i32_2 = arith.constant 0 : i32
    return %c0_i32, %c0_i32_0, %c0_i32_1 : i32, i32, i32
  }
  func.func @transform_3(%arg0: i32, %arg1: i32) -> (i32, i32, i32) {
    %c0_i32 = arith.constant 0 : i32
    %c0_i32_0 = arith.constant 0 : i32
    return %arg0, %c0_i32, %arg1 : i32, i32, i32
  }
}

</mosaic_0001>

<bundles_post_ra>
// kernel: _lambda_.2
= control target key start
LH: loop header
LB: loop body
LE: loop exit
PB: predicated region body
PF: predicated region fallthrough
CT: control target
= control target key end

     0   :  { %s1288_s12 = smov 0   ;;  %s1290_s13 = smov 0   ;;  %s1482_s0 = inlined_call_operand.vmem [shape: bf16[2,16,4], index: 0, kind: input, shape index: {}]   ;;  %s1483_s1 = inlined_call_operand.vmem [shape: bf16[2,16,64], index: 1, kind: input, shape index: {}]   ;;  %s1484_s2 = inlined_call_operand.vmem [shape: bf16[9,16,64], index: 2, kind: input, shape index: {}]   ;;  %s1485_s3 = inlined_call_operand.vmem [shape: f32[2,1,4], index: 3, kind: output, shape index: {}]  }
   0x1   :  { %s1292_s14 = smov 0  }
   0x2 LB: > { %s25_s15 = sadd.s32 1, %s1260_s13  ;;  %p977_p0 = scmp.ge.s32.totalorder %s1264_s14, 1  ;;  %s1264_s14 = sphi %s1292_s14, %s13_s14   ;;  %s1260_s13 = sphi %s1290_s13, %s1491_s13   ;;  %s1256_s12 = sphi %s1288_s12, %s1490_s12  }
   0x3   : > { %p27_p1 = scmp.ge.s32.totalorder %s25_s15, 2  ;;  %p166_p2 = scmp.lt.s32.totalorder %s1264_s14, 3 }
   0x5   : > { %s1493_s15 = smov (%p27_p1, %s25_s15), 0  ;;  %p167_p3 = pnand %p977_p0, %p166_p2 }
   0x6   : > { %p199_p4 = scmp.lt.s32.totalorder (!%p167_p3), %s1256_s12, 1 }
   0x7   : > { %170 = sbr.rel (%p167_p3) target bundleno = 688 (0x2b0), region = 32 }
   0xc   : > { %s1495_s12 = smov (!%p199_p4, %s1256_s12), 1  ;;  %vm251_vm0 = vcmask 130048   ;;  %v1266_v6 = vmov 0.0   ;;  %vm1267_vm1 = vmmov 0   ;;  %v1223_v19 = vld [vmem:[%s1484_s2] sm:$0xff]   ;;  %v1224_v20 = vld [vmem:[%s1484_s2 + $0x8] sm:$0xff]  }
   0xd   : > { %s1024_s16 = sshll.u32 %s1495_s12, 3  ;;  %1086 = vmatprep.subr.bf16.mxu1 %v1266_v6  ;;  %1094 = vmatprep.mubr.msk.bf16.mxu1 %vm1267_vm1, %v1266_v6  ;;  %vm340_vm2 = vcmask 523264   ;;  %v1225_v21 = vld [vmem:[%s1484_s2 + $0x10] sm:$0xff]   ;;  %v1226_v22 = vld [vmem:[%s1484_s2 + $0x18] sm:$0xff]   ;;  %v1227_v23 = vld [vmem:[%s1484_s2 + $0x20] sm:$0xff]   ;;  %vm863_vm15 = vcmask 31744   ;;  %s217_s20 = scalar_lea.vmem %s1485_s3, %s1495_s12 }
   0xe   : > { %s211_s19 = scalar_lea.vmem %s1483_s1, %s1024_s16  ;;  %s206_s22 = scalar_lea.vmem %s1482_s0, %s1024_s16  ;;  %v1228_v24 = vld [vmem:[%s1484_s2 + $0x28] sm:$0xff]   ;;  %v1229_v25 = vld [vmem:[%s1484_s2 + $0x30] sm:$0xff]   ;;  %v1230_v26 = vld [vmem:[%s1484_s2 + $0x38] sm:$0xff]  }
   0xf   : > { %v1221_v0 = vld [vmem:[%s211_s19] sm:$0xff]  }
  0x10   : > { %v1222_v1 = vld [vmem:[%s206_s22] sm:$0xff]   ;;  %229 = vxpose.xlu0.c.b16.start.end [1/1] (short) (narrow) %v1221_v0, 64 }
  0x11   : > { %1076 = vmatprep.subr.bf16.mxu0 %v1222_v1  ;;  %v1231_v27 = vld [vmem:[%s1484_s2 + $0x40] sm:$0xff]  }
  0x12   : > { %1077 = vmatpush3.bf16.msra.mxu0 %v1222_v1 }
  0x13   : > { %1098 = vmatprep.subr.bf16.mxu0 %v1266_v6 }
  0x72   : > { %v237_v2 = vpop.trf.xlu0 }
  0x73   : > { %1078 = vmatprep.mubr.msk.bf16.mxu0 %vm251_vm0, %v237_v2 }
  0x76   : > { %v238_v3 = vpop.trf.xlu0 }
  0x77   : > { %1079 = vmatmul.mubr.msk.bf16.vlgmr.msra.gmra.mxu0 %vm251_vm0, %v238_v3 }
  0x7a   : > { %v239_v4 = vpop.trf.xlu0 }
  0x7b   : > { %1082 = vmatprep.mubr.msk.bf16.mxu0 %vm251_vm0, %v239_v4 }
  0x7e   : > { %v240_v5 = vpop.trf.xlu0 }
  0x7f   : > { %1083 = vmatmul.mubr.msk.bf16.gmra.mxu0 %vm251_vm0, %v240_v5  ;;  %vm888_vm0 = vcmask 24576  }
  0x80   : > { %1106 = vmatprep.mubr.msk.bf16.mxu0 %vm1267_vm1, %v1266_v6 }
 0x137   : > { %v1080_v7 = vpop.f32.mrf.mxu0 }
 0x139   : > { %v298_v8 = vpop.f32.mrf.mxu0 }
 0x13b   : > { %v1081_v9 = vpop.f32.mrf.mxu0 }
 0x13c   : > { %v1333_v17 = vpack.c.bf16 %v1081_v9, %v1080_v7 }
 0x13d   : > { %v301_v10 = vpop.f32.mrf.mxu0 }
 0x13e   : > { %v1339_v18 = vpack.c.bf16 %v301_v10, %v298_v8 }
 0x13f   : > { %v1084_v11 = vpop.f32.mrf.mxu0 }
 0x141   : > { %v314_v12 = vpop.f32.mrf.mxu0 }
 0x143   : > { %v1085_v13 = vpop.f32.mrf.mxu0 }
 0x144   : > { %v1321_v14 = vpack.c.bf16 %v1085_v13, %v1084_v11 }
 0x145   : > { %v317_v15 = vpop.f32.mrf.mxu0 }
 0x146   : > { %1087 = vmatpush3.bf16.msra.mxu1 %v1321_v14  ;;  %1099 = vmatpush3.bf16.msra.mxu0 %v1321_v14  ;;  %v1327_v16 = vpack.c.bf16 %v317_v15, %v314_v12 }
 0x147   : > { %1088 = vmatprep.subr.bf16.mxu1 %v1266_v6  ;;  %1100 = vmatprep.subr.bf16.mxu0 %v1266_v6 }
 0x14a   : > { %1089 = vmatpush3.bf16.msra.mxu1 %v1327_v16  ;;  %1101 = vmatpush3.bf16.msra.mxu0 %v1327_v16 }
 0x14b   : > { %1090 = vmatprep.subr.bf16.mxu1 %v1266_v6  ;;  %1102 = vmatprep.subr.bf16.mxu0 %v1266_v6 }
 0x14e   : > { %1091 = vmatpush3.bf16.msra.mxu1 %v1333_v17  ;;  %1103 = vmatpush3.bf16.msra.mxu0 %v1333_v17 }
 0x14f   : > { %1092 = vmatprep.subr.bf16.mxu1 %v1266_v6  ;;  %1104 = vmatprep.subr.bf16.mxu0 %v1266_v6 }
 0x152   : > { %1093 = vmatpush3.bf16.msra.mxu1 %v1339_v18  ;;  %1105 = vmatpush3.bf16.msra.mxu0 %v1339_v18 }
 0x153   : > { %1110 = vmatprep.subr.bf16.mxu1 %v1266_v6  ;;  %1122 = vmatprep.subr.bf16.mxu0 %v1266_v6 }
 0x155   : > { %1095 = vmatmul.mubr.msk.bf16.vlgmr.msra.gmra.mxu1 %vm340_vm2, %v1223_v19  ;;  %1107 = vmatmul.mubr.msk.bf16.vlgmr.msra.gmra.mxu0 %vm340_vm2, %v1224_v20 }
 0x156   : > { %1111 = vmatpush3.bf16.msra.mxu1 %v1321_v14  ;;  %1123 = vmatpush3.bf16.msra.mxu0 %v1321_v14 }
 0x157   : > { %1112 = vmatprep.subr.bf16.mxu1 %v1266_v6  ;;  %1124 = vmatprep.subr.bf16.mxu0 %v1266_v6 }
 0x158   : > { %1118 = vmatprep.mubr.msk.bf16.mxu1 %vm1267_vm1, %v1266_v6  ;;  %1130 = vmatprep.mubr.msk.bf16.mxu0 %vm1267_vm1, %v1266_v6 }
 0x15a   : > { %1113 = vmatpush3.bf16.msra.mxu1 %v1327_v16  ;;  %1125 = vmatpush3.bf16.msra.mxu0 %v1327_v16 }
 0x15b   : > { %1114 = vmatprep.subr.bf16.mxu1 %v1266_v6  ;;  %1126 = vmatprep.subr.bf16.mxu0 %v1266_v6 }
 0x15e   : > { %1115 = vmatpush3.bf16.msra.mxu1 %v1333_v17  ;;  %1127 = vmatpush3.bf16.msra.mxu0 %v1333_v17 }
 0x15f   : > { %1116 = vmatprep.subr.bf16.mxu1 %v1266_v6  ;;  %1128 = vmatprep.subr.bf16.mxu0 %v1266_v6 }
 0x162   : > { %1117 = vmatpush3.bf16.msra.mxu1 %v1339_v18  ;;  %1129 = vmatpush3.bf16.msra.mxu0 %v1339_v18 }
 0x163   : > { %1134 = vmatprep.subr.bf16.mxu1 %v1266_v6  ;;  %1146 = vmatprep.subr.bf16.mxu0 %v1266_v6 }
 0x165   : > { %1119 = vmatmul.mubr.msk.bf16.vlgmr.msra.gmra.mxu1 %vm340_vm2, %v1225_v21  ;;  %1131 = vmatmul.mubr.msk.bf16.vlgmr.msra.gmra.mxu0 %vm340_vm2, %v1226_v22 }
 0x166   : > { %1135 = vmatpush3.bf16.msra.mxu1 %v1321_v14  ;;  %1147 = vmatpush3.bf16.msra.mxu0 %v1321_v14 }
 0x167   : > { %1136 = vmatprep.subr.bf16.mxu1 %v1266_v6  ;;  %1148 = vmatprep.subr.bf16.mxu0 %v1266_v6 }
 0x168   : > { %1142 = vmatprep.mubr.msk.bf16.mxu1 %vm1267_vm1, %v1266_v6  ;;  %1154 = vmatprep.mubr.msk.bf16.mxu0 %vm1267_vm1, %v1266_v6 }
 0x16a   : > { %1137 = vmatpush3.bf16.msra.mxu1 %v1327_v16  ;;  %1149 = vmatpush3.bf16.msra.mxu0 %v1327_v16 }
 0x16b   : > { %1138 = vmatprep.subr.bf16.mxu1 %v1266_v6  ;;  %1150 = vmatprep.subr.bf16.mxu0 %v1266_v6 }
 0x16e   : > { %1139 = vmatpush3.bf16.msra.mxu1 %v1333_v17  ;;  %1151 = vmatpush3.bf16.msra.mxu0 %v1333_v17 }
 0x16f   : > { %1140 = vmatprep.subr.bf16.mxu1 %v1266_v6  ;;  %1152 = vmatprep.subr.bf16.mxu0 %v1266_v6 }
 0x172   : > { %1141 = vmatpush3.bf16.msra.mxu1 %v1339_v18  ;;  %1153 = vmatpush3.bf16.msra.mxu0 %v1339_v18 }
 0x173   : > { %1158 = vmatprep.subr.bf16.mxu1 %v1266_v6  ;;  %1170 = vmatprep.subr.bf16.mxu0 %v1266_v6 }
 0x175   : > { %1143 = vmatmul.mubr.msk.bf16.vlgmr.msra.gmra.mxu1 %vm340_vm2, %v1227_v23  ;;  %1155 = vmatmul.mubr.msk.bf16.vlgmr.msra.gmra.mxu0 %vm340_vm2, %v1228_v24 }
 0x176   : > { %1159 = vmatpush3.bf16.msra.mxu1 %v1321_v14  ;;  %1171 = vmatpush3.bf16.msra.mxu0 %v1321_v14 }
 0x177   : > { %1160 = vmatprep.subr.bf16.mxu1 %v1266_v6  ;;  %1172 = vmatprep.subr.bf16.mxu0 %v1266_v6 }
 0x178   : > { %1166 = vmatprep.mubr.msk.bf16.mxu1 %vm1267_vm1, %v1266_v6  ;;  %1178 = vmatprep.mubr.msk.bf16.mxu0 %vm1267_vm1, %v1266_v6 }
 0x17a   : > { %1161 = vmatpush3.bf16.msra.mxu1 %v1327_v16  ;;  %1173 = vmatpush3.bf16.msra.mxu0 %v1327_v16 }
 0x17b   : > { %1162 = vmatprep.subr.bf16.mxu1 %v1266_v6  ;;  %1174 = vmatprep.subr.bf16.mxu0 %v1266_v6 }
 0x17e   : > { %1163 = vmatpush3.bf16.msra.mxu1 %v1333_v17  ;;  %1175 = vmatpush3.bf16.msra.mxu0 %v1333_v17 }
 0x17f   : > { %1164 = vmatprep.subr.bf16.mxu1 %v1266_v6  ;;  %1176 = vmatprep.subr.bf16.mxu0 %v1266_v6 }
 0x182   : > { %1165 = vmatpush3.bf16.msra.mxu1 %v1339_v18  ;;  %1177 = vmatpush3.bf16.msra.mxu0 %v1339_v18 }
 0x183   : > { %1182 = vmatprep.subr.bf16.mxu1 %v1266_v6 }
 0x185   : > { %1167 = vmatmul.mubr.msk.bf16.vlgmr.msra.gmra.mxu1 %vm340_vm2, %v1229_v25  ;;  %1179 = vmatmul.mubr.msk.bf16.vlgmr.msra.gmra.mxu0 %vm340_vm2, %v1230_v26 }
 0x186   : > { %1183 = vmatpush3.bf16.msra.mxu1 %v1321_v14  ;;  %1190 = vmatprep.mubr.msk.bf16.mxu1 %vm1267_vm1, %v1266_v6 }
 0x187   : > { %1184 = vmatprep.subr.bf16.mxu1 %v1266_v6 }
 0x18a   : > { %1185 = vmatpush3.bf16.msra.mxu1 %v1327_v16 }
 0x18b   : > { %1186 = vmatprep.subr.bf16.mxu1 %v1266_v6 }
 0x18e   : > { %1187 = vmatpush3.bf16.msra.mxu1 %v1333_v17 }
 0x18f   : > { %1188 = vmatprep.subr.bf16.mxu1 %v1266_v6 }
 0x192   : > { %1189 = vmatpush3.bf16.msra.mxu1 %v1339_v18 }
 0x195   : > { %1191 = vmatmul.mubr.msk.bf16.vlgmr.msra.gmra.mxu1 %vm340_vm2, %v1231_v27 }
 0x215   : > { %v378_v28 = vpop.f32.mrf.mxu1  ;;  %v430_v29 = vpop.f32.mrf.mxu0 }
 0x216   : > { %v437_v52 = vmax.f32 %v378_v28, %v430_v29 }
 0x217   : > { %v1096_v30 = vpop.f32.mrf.mxu1  ;;  %v1108_v31 = vpop.f32.mrf.mxu0 }
 0x219   : > { %v381_v32 = vpop.f32.mrf.mxu1  ;;  %v433_v33 = vpop.f32.mrf.mxu0 }
 0x21a   : > { %v438_v56 = vmax.f32 %v381_v32, %v433_v33 }
 0x21b   : > { %v1097_v34 = vpop.f32.mrf.mxu1  ;;  %v1109_v35 = vpop.f32.mrf.mxu0 }
 0x225   : > { %v484_v36 = vpop.f32.mrf.mxu1  ;;  %v538_v37 = vpop.f32.mrf.mxu0 }
 0x226   : > { %v491_v53 = vmax.f32 %v437_v52, %v484_v36 }
 0x227   : > { %v1120_v38 = vpop.f32.mrf.mxu1  ;;  %v1132_v39 = vpop.f32.mrf.mxu0 }
 0x228   : > { %v545_v59 = vmax.f32 %v491_v53, %v538_v37 }
 0x229   : > { %v487_v40 = vpop.f32.mrf.mxu1  ;;  %v541_v41 = vpop.f32.mrf.mxu0 }
 0x22a   : > { %v492_v60 = vmax.f32 %v438_v56, %v487_v40 }
 0x22b   : > { %v1121_v42 = vpop.f32.mrf.mxu1  ;;  %v1133_v43 = vpop.f32.mrf.mxu0 }
 0x22c   : > { %v546_v2 = vmax.f32 %v492_v60, %v541_v41 }
 0x235   : > { %v592_v44 = vpop.f32.mrf.mxu1  ;;  %v646_v45 = vpop.f32.mrf.mxu0 }
 0x236   : > { %v599_v63 = vmax.f32 %v545_v59, %v592_v44 }
 0x237   : > { %v1144_v46 = vpop.f32.mrf.mxu1  ;;  %v1156_v47 = vpop.f32.mrf.mxu0 }
 0x238   : > { %v653_v3 = vmax.f32 %v599_v63, %v646_v45 }
 0x239   : > { %v595_v48 = vpop.f32.mrf.mxu1  ;;  %v649_v49 = vpop.f32.mrf.mxu0 }
 0x23a   : > { %v600_v4 = vmax.f32 %v546_v2, %v595_v48 }
 0x23b   : > { %v1145_v50 = vpop.f32.mrf.mxu1  ;;  %v1157_v51 = vpop.f32.mrf.mxu0 }
 0x23c   : > { %v654_v6 = vmax.f32 %v600_v4, %v649_v49 }
 0x245   : > { %v700_v54 = vpop.f32.mrf.mxu1  ;;  %v754_v55 = vpop.f32.mrf.mxu0 }
 0x246   : > { %v707_v5 = vmax.f32 %v653_v3, %v700_v54 }
 0x247   : > { %v1168_v57 = vpop.f32.mrf.mxu1  ;;  %v1180_v58 = vpop.f32.mrf.mxu0 }
 0x248   : > { %v761_v7 = vmax.f32 %v707_v5, %v754_v55 }
 0x249   : > { %v703_v61 = vpop.f32.mrf.mxu1  ;;  %v757_v62 = vpop.f32.mrf.mxu0 }
 0x24a   : > { %v708_v8 = vmax.f32 %v654_v6, %v703_v61 }
 0x24b   : > { %v1169_v0 = vpop.f32.mrf.mxu1  ;;  %v1181_v1 = vpop.f32.mrf.mxu0 }
 0x24c   : > { %v762_v12 = vmax.f32 %v708_v8, %v757_v62 }
 0x255   : > { %v808_v9 = vpop.f32.mrf.mxu1 }
 0x256   : > { %v815_v10 = vmax.f32 %v761_v7, %v808_v9 }
 0x257   : > { %v1192_v11 = vpop.f32.mrf.mxu1 }
 0x258   : > { %v817_v13 = vmax.f32 %v815_v10, 0.0 }
 0x259   : > { %v811_v14 = vpop.f32.mrf.mxu1 }
 0x25a   : > { %vm1449_vm3 = vcmp.gt.f32.partialorder %v817_v13, 0.0  ;;  %v816_v16 = vmax.f32 %v762_v12, %v811_v14 }
 0x25b   : > { %v821_v17 = vsel %vm1449_vm3, %v817_v13, 1.0  ;;  %v1193_v18 = vpop.f32.mrf.mxu1 }
 0x25c   : > { %1232 = vrsqrt.f32 %v821_v17  ;;  %v818_v19 = vmax.f32 %v816_v16, 0.0  ;;  %vm825_vm5 = vcmp.eq.f32.partialorder %v821_v17, inf  ;;  %v828_v24 = vand.u32 2147483648, %v821_v17 }
 0x25d   : > { %vm827_vm6 = vcmp.eq.f32.partialorder %v821_v17, 0.0 }
 0x25e   : > { %vm1455_vm4 = vcmp.gt.f32.partialorder %v818_v19, 0.0 }
 0x25f   : > { %v822_v21 = vsel %vm1455_vm4, %v818_v19, 1.0 }
 0x260   : > { %1234 = vrsqrt.f32 %v822_v21  ;;  %vm832_vm7 = vcmp.eq.f32.partialorder %v822_v21, inf  ;;  %v835_v31 = vand.u32 2147483648, %v822_v21  ;;  %vm834_vm9 = vcmp.eq.f32.partialorder %v822_v21, 0.0 }
 0x269   : > { %v1233_v22 = vpop.eup %1232 }
 0x26a   : > { %v824_v23 = vmul.f32 %v1233_v22, %v821_v17 }
 0x26c   : > { %v826_v25 = vsel %vm825_vm5, %v821_v17, %v824_v23 }
 0x26d   : > { %v829_v26 = vsel %vm827_vm6, %v828_v24, %v826_v25  ;;  %v1235_v27 = vpop.eup %1234 }
 0x26e   : > { %v837_v28 = vmul.f32 %v829_v26, %v821_v17  ;;  %v831_v29 = vmul.f32 %v1235_v27, %v822_v21 }
 0x270   : > { %v839_v30 = vsel %vm1449_vm3, %v837_v28, 0.0  ;;  %v833_v32 = vsel %vm832_vm7, %v822_v21, %v831_v29 }
 0x271   : > { %vm841_vm8 = vcmp.gt.f32.partialorder %v839_v30, 0.0  ;;  %v836_v34 = vsel %vm834_vm9, %v835_v31, %v833_v32 }
 0x272   : > { %v843_v33 = vsel %vm841_vm8, %v839_v30, 1.0  ;;  %v838_v35 = vmul.f32 %v836_v34, %v822_v21 }
 0x273   : > { %1236 = vrsqrt.f32 %v843_v33  ;;  %vm847_vm11 = vcmp.eq.f32.partialorder %v843_v33, inf  ;;  %v850_v40 = vand.u32 2147483648, %v843_v33  ;;  %vm849_vm12 = vcmp.eq.f32.partialorder %v843_v33, 0.0 }
 0x274   : > { %v840_v36 = vsel %vm1455_vm4, %v838_v35, 0.0 }
 0x275   : > { %vm842_vm10 = vcmp.gt.f32.partialorder %v840_v36, 0.0 }
 0x276   : > { %v844_v37 = vsel %vm842_vm10, %v840_v36, 1.0 }
 0x277   : > { %1238 = vrsqrt.f32 %v844_v37  ;;  %vm854_vm13 = vcmp.eq.f32.partialorder %v844_v37, inf  ;;  %v857_v46 = vand.u32 2147483648, %v844_v37  ;;  %vm856_vm14 = vcmp.eq.f32.partialorder %v844_v37, 0.0 }
 0x280   : > { %v1237_v38 = vpop.eup %1236 }
 0x281   : > { %v846_v39 = vmul.f32 %v1237_v38, %v843_v33 }
 0x283   : > { %v848_v41 = vsel %vm847_vm11, %v843_v33, %v846_v39 }
 0x284   : > { %v851_v42 = vsel %vm849_vm12, %v850_v40, %v848_v41  ;;  %v1239_v43 = vpop.eup %1238 }
 0x285   : > { %v859_v44 = vmul.f32 %v851_v42, %v843_v33  ;;  %v853_v45 = vmul.f32 %v1239_v43, %v844_v37 }
 0x287   : > { %v855_v47 = vsel %vm854_vm13, %v844_v37, %v853_v45  ;;  %v861_v49 = vsel %vm841_vm8, %v859_v44, 0.0 }
 0x288   : > { %v858_v48 = vsel %vm856_vm14, %v857_v46, %v855_v47  ;;  %v864_v52 = vsel %vm863_vm15, %v861_v49, 0.0  ;;  %v875_v56 = vmul.f32 %v861_v49, %v861_v49 }
 0x289   : > { %v860_v50 = vmul.f32 %v858_v48, %v844_v37 }
 0x28a   : > { %v877_v60 = vsel %vm863_vm15, %v875_v56, 0.0 }
 0x28b   : > { %v862_v51 = vsel %vm842_vm10, %v860_v50, 0.0 }
 0x28c   : > { %v865_v53 = vsel %vm863_vm15, %v862_v51, 0.0  ;;  %v876_v54 = vmul.f32 %v862_v51, %v862_v51 }
 0x28d   : > { %v866_v55 = vadd.f32 %v865_v53, %v864_v52 }
 0x28e   : > { %v878_v58 = vsel %vm863_vm15, %v876_v54, 0.0 }
 0x28f   : > { %v867_v57 = vrot.slane %v866_v55, 4  ;;  %v879_v62 = vadd.f32 %v878_v58, %v877_v60 }
 0x291   : > { %v868_v59 = vadd.f32 %v867_v57, %v866_v55  ;;  %v880_v1 = vrot.slane %v879_v62, 4 }
 0x293   : > { %v869_v61 = vrot.slane %v868_v59, 2  ;;  %v881_v4 = vadd.f32 %v880_v1, %v879_v62 }
 0x295   : > { %v870_v63 = vadd.f32 %v869_v61, %v868_v59  ;;  %v882_v5 = vrot.slane %v881_v4, 2 }
 0x297   : > { %v871_v0 = vrot.slane %v870_v63, 1  ;;  %v883_v6 = vadd.f32 %v882_v5, %v881_v4 }
 0x299   : > { %v872_v2 = vadd.f32 %v871_v0, %v870_v63  ;;  %v884_v7 = vrot.slane %v883_v6, 1 }
 0x29b   : > { %v873_v3 = vadd.f32 0.03, %v872_v2  ;;  %v885_v9 = vadd.f32 %v884_v7, %v883_v6 }
 0x29d   : > { %1240 = vrcp.f32 %v873_v3 }
 0x2aa   : > { %v1241_v8 = vpop.eup %1240 }
 0x2ab   : > { %v886_v10 = vmul.f32 %v1241_v8, %v1241_v8 }
 0x2ad   : > { %v887_v11 = vmul.f32 %v886_v10, %v885_v9 }
 0x2af   : > { %889 = vst.msk [vmem:[%s217_s20] sm:$0x1] %vm888_vm0, %v887_v11 }
 0x2b0 PF: > { %s13_s14 = sadd.s32 1, %s1264_s14   ;;  %s1490_s12 = smov %s1260_s13 }
 0x2b1   : > { %p10_p5 = scmp.ge.s32.totalorder %s13_s14, 4   ;;  %s1491_s13 = smov %s1493_s15 }
 0x2b3   :  { %12 = sbr.rel (!%p10_p5) target bundleno = 2 (0x2), region = 73 }

</bundles_post_ra>
